<compile_context>
chip_gen: v5e
topology: v5e:2x2
jax: 0.10.0
libtpu: 0.0.40
codegen_flags: <defaults>
</compile_context>

<pallas_src>
import functools
import math

import jax
import jax.numpy as jnp
from jax import lax
from jax.experimental import pallas as pl
from jax.experimental.pallas import tpu as pltpu


_ROW_TILE = 512               # row tile for the (B*L, ...) kernels
_Q_TILE = 256                 # query tile for attention (256-multiple, v7x-safe)
_NEG = -1e30                  # finite "minus infinity" for masking
_VMEM_LIMIT = 32 * 1024 * 1024

# Single-buffer grid-constant weight blocks (saves VMEM, esp. on v7x's 64 MiB).
# Falls back to default double-buffering if this Pallas rejects Buffered(1).
_SINGLE_BUFFER_WEIGHTS = hasattr(pl, "Buffered")


def _wspec(shape, index_map):
    """BlockSpec for a grid-constant operand (weights / biases / tables)."""
    if _SINGLE_BUFFER_WEIGHTS:
        return pl.BlockSpec(shape, index_map, pipeline_mode=pl.Buffered(1))
    return pl.BlockSpec(shape, index_map)


def _cparams(*sem):
    return pltpu.CompilerParams(dimension_semantics=sem,
                                vmem_limit_bytes=_VMEM_LIMIT)


def _tiles(m, max_tile=_ROW_TILE):
    if m <= max_tile:
        return m, 1
    tm = max_tile
    while m % tm != 0 and tm > 8:
        tm //= 2
    if m % tm != 0:
        return m, 1
    return tm, m // tm


def _q_tile(L):
    if L <= _Q_TILE:
        return L
    for t in (_Q_TILE, 128, 64, 32, 16, 8):
        if L % t == 0:
            return t
    return L


# ----------------------------- Pallas kernels ------------------------------

def _linear_kernel(x_ref, w_ref, b_ref, o_ref):
    x = x_ref[...].astype(jnp.bfloat16)
    o_ref[...] = (jnp.dot(x, w_ref[...],
                          preferred_element_type=jnp.float32) + b_ref[...])


def linear(x2d, w_bf16, b):
    m, k = x2d.shape
    n = w_bf16.shape[1]
    tm, g = _tiles(m)
    return pl.pallas_call(
        _linear_kernel,
        out_shape=jax.ShapeDtypeStruct((m, n), jnp.float32),
        grid=(g,),
        in_specs=[pl.BlockSpec((tm, k), lambda i: (i, 0)),
                  _wspec((k, n), lambda i: (0, 0)),
                  _wspec((1, n), lambda i: (0, 0))],
        out_specs=pl.BlockSpec((tm, n), lambda i: (i, 0)),
        compiler_params=_cparams("parallel"),
    )(x2d, w_bf16, b.reshape(1, n))


def _post_attn_kernel(a_ref, r_ref, g1_ref, bn1_ref, w1_ref, b1_ref,
                      w2_ref, b2_ref, g2_ref, bn2_ref, o_ref):
    # x = LN1(attn + residual); y = x + FFN(x); out = LN2(y)   (after_norm=True)
    x = a_ref[...] + r_ref[...]
    mu = jnp.mean(x, axis=-1, keepdims=True)
    var = jnp.mean((x - mu) ** 2, axis=-1, keepdims=True)
    y = (x - mu) * lax.rsqrt(var + 1e-5) * g1_ref[...] + bn1_ref[...]

    h = jnp.dot(y.astype(jnp.bfloat16), w1_ref[...],
                preferred_element_type=jnp.float32) + b1_ref[...]
    h = jnp.maximum(h, 0.0)                       # ReLU
    z = y + jnp.dot(h.astype(jnp.bfloat16), w2_ref[...],
                    preferred_element_type=jnp.float32) + b2_ref[...]

    mu2 = jnp.mean(z, axis=-1, keepdims=True)
    var2 = jnp.mean((z - mu2) ** 2, axis=-1, keepdims=True)
    o_ref[...] = (z - mu2) * lax.rsqrt(var2 + 1e-5) * g2_ref[...] + bn2_ref[...]


def post_attn_ffn(attn2d, res2d, lp):
    m, d = attn2d.shape
    f = lp['ffn_w1'].shape[1]
    tm, g = _tiles(m)
    row = lambda i: (i, 0)
    full = lambda i: (0, 0)
    return pl.pallas_call(
        _post_attn_kernel,
        out_shape=jax.ShapeDtypeStruct((m, d), jnp.float32),
        grid=(g,),
        in_specs=[pl.BlockSpec((tm, d), row),
                  pl.BlockSpec((tm, d), row),
                  _wspec((1, d), full),
                  _wspec((1, d), full),
                  _wspec((d, f), full),
                  _wspec((1, f), full),
                  _wspec((f, d), full),
                  _wspec((1, d), full),
                  _wspec((1, d), full),
                  _wspec((1, d), full)],
        out_specs=pl.BlockSpec((tm, d), row),
        compiler_params=_cparams("parallel"),
    )(attn2d, res2d,
      lp['ln1_g'].reshape(1, d), lp['ln1_b'].reshape(1, d),
      lp['ffn_w1'].astype(jnp.bfloat16), lp['ffn_b1'].reshape(1, f),
      lp['ffn_w2'].astype(jnp.bfloat16), lp['ffn_b2'].reshape(1, d),
      lp['ln2_g'].reshape(1, d), lp['ln2_b'].reshape(1, d))


def _make_rel_attn_kernel(n_head, hd, d_model):
    half = hd // 2

    def kernel(xq_ref, xf_ref, w_ref, scq_ref, scf_ref, rr_ref, rw_ref,
               m_ref, o_ref):
        # adatrans relative attention (scale=False) for one (batch, q-tile):
        #   score[i,j] = (q_i + r_r).k_j + (q_i + r_w).R_{j-i} + k_j.R_{i-j}
        # The two relative terms use the exact trig identity, so the whole
        # score is one matmul with contraction dim 3*hd per head.
        xq = xq_ref[0]                       # (tq, D)  query rows (f32)
        xf = xf_ref[0]                       # (L,  D)  key/value rows (f32)
        w = w_ref[...]                       # (D, 2D)  qv projection (bf16)
        scq = scq_ref[...]                   # (tq, hd) [sin_i | cos_i]
        scf = scf_ref[...]                   # (L,  hd) [sin_j | cos_j]
        rr = rr_ref[...]                     # (H, hd)  r_r_bias
        rw = rw_ref[...]                     # (H, hd)  r_w_bias
        bias = jnp.where(m_ref[0] > 0.0, 0.0, _NEG)     # (1, L) key-mask bias

        # fused qv projection (adatrans: key = x, no projection)
        q_all = jnp.dot(xq.astype(jnp.bfloat16), w[:, :d_model],
                        preferred_element_type=jnp.float32)     # (tq, D)
        v_all = jnp.dot(xf.astype(jnp.bfloat16), w[:, d_model:],
                        preferred_element_type=jnp.float32)     # (L,  D)

        sin_q, cos_q = scq[:, :half], scq[:, half:]
        sin_f, cos_f = scf[:, :half], scf[:, half:]
        dn = (((1,), (1,)), ((), ()))        # contract last dims (a @ b.T)

        for h in range(n_head):              # static unroll over heads
            sl = slice(h * hd, (h + 1) * hd)
            q = q_all[:, sl]                 # (tq, hd)
            v = v_all[:, sl]                 # (L,  hd)
            k = xf[:, sl]                    # (L,  hd)

            # rot_i(q + r_w): rotate by the query position
            qw = q + rw[h]
            a1 = qw[:, :half] * cos_q + qw[:, half:] * sin_q
            a2 = qw[:, half:] * cos_q - qw[:, :half] * sin_q
            # rot_j(k): rotate by the key position
            b1 = k[:, :half] * cos_f + k[:, half:] * sin_f
            b2 = k[:, half:] * cos_f - k[:, :half] * sin_f

            # single fused score matmul:
            #   (q+r_r).k + [a1|a2].[sin_j|cos_j] + [sin_i|cos_i].[b1|b2]
            lhs = jnp.concatenate([q + rr[h], a1, a2, scq], axis=-1)
            rhs = jnp.concatenate([k, scf, b1, b2], axis=-1)
            s = lax.dot_general(lhs.astype(jnp.bfloat16),
                                rhs.astype(jnp.bfloat16), dn,
                                preferred_element_type=jnp.float32)   # (tq, L)

            s = s + bias                                  # mask key positions
            s = s - jnp.max(s, axis=-1, keepdims=True)
            p = jnp.exp(s)
            p = p * pl.reciprocal(jnp.sum(p, axis=-1, keepdims=True),
                                  approx=True)
            out_h = jnp.dot(p.astype(jnp.bfloat16), v.astype(jnp.bfloat16),
                            preferred_element_type=jnp.float32)
            o_ref[0, :, sl] = out_h          # direct static-slice store

    return kernel


def rel_attention(x, qv_w_bf16, sincos, r_r_bias, r_w_bias, mask_f, n_head):
    B, L, d_model = x.shape
    hd = d_model // n_head
    tq = _q_tile(L)
    nq = L // tq
    kernel = _make_rel_attn_kernel(n_head, hd, d_model)
    return pl.pallas_call(
        kernel,
        out_shape=jax.ShapeDtypeStruct((B, L, d_model), jnp.float32),
        grid=(B, nq),
        in_specs=[pl.BlockSpec((1, tq, d_model), lambda b, qi: (b, qi, 0)),
                  pl.BlockSpec((1, L, d_model), lambda b, qi: (b, 0, 0)),
                  _wspec((d_model, 2 * d_model), lambda b, qi: (0, 0)),
                  pl.BlockSpec((tq, hd), lambda b, qi: (qi, 0)),
                  _wspec((L, hd), lambda b, qi: (0, 0)),
                  _wspec((n_head, hd), lambda b, qi: (0, 0)),
                  _wspec((n_head, hd), lambda b, qi: (0, 0)),
                  pl.BlockSpec((1, 1, L), lambda b, qi: (b, 0, 0))],
        out_specs=pl.BlockSpec((1, tq, d_model), lambda b, qi: (b, qi, 0)),
        compiler_params=_cparams("parallel", "parallel"),
    )(x, x, qv_w_bf16, sincos, sincos, r_r_bias, r_w_bias, mask_f)


def _out_logsoftmax_kernel(x_ref, w_ref, b_ref, o_ref, *, n_tags):
    z = jnp.dot(x_ref[...].astype(jnp.bfloat16), w_ref[...],
                preferred_element_type=jnp.float32) + b_ref[...]
    col = lax.broadcasted_iota(jnp.int32, z.shape, 1)
    z = jnp.where(col < n_tags, z, _NEG)          # exclude padded classes
    z = z - jnp.max(z, axis=-1, keepdims=True)
    o_ref[...] = z - jnp.log(jnp.sum(jnp.exp(z), axis=-1, keepdims=True))


def out_fc_logsoftmax(x2d, w, b):
    """Returns 128-lane-padded log-probs; padded classes are ~-1e30."""
    m, d = x2d.shape
    n_tags = w.shape[1]
    tpad = ((n_tags + 127) // 128) * 128          # lane-dense output stores
    w_p = jnp.pad(w, ((0, 0), (0, tpad - n_tags))).astype(jnp.bfloat16)
    b_p = jnp.pad(b, (0, tpad - n_tags)).reshape(1, tpad)
    tm, g = _tiles(m)
    return pl.pallas_call(
        functools.partial(_out_logsoftmax_kernel, n_tags=n_tags),
        out_shape=jax.ShapeDtypeStruct((m, tpad), jnp.float32),
        grid=(g,),
        in_specs=[pl.BlockSpec((tm, d), lambda i: (i, 0)),
                  _wspec((d, tpad), lambda i: (0, 0)),
                  _wspec((1, tpad), lambda i: (0, 0))],
        out_specs=pl.BlockSpec((tm, tpad), lambda i: (i, 0)),
        compiler_params=_cparams("parallel"),
    )(x2d, w_p, b_p)


# ------------------------------- glue (JAX) --------------------------------

def crf_nll(logits, tags, mask, trans, start, end):
    """fastNLP-style CRF negative log-likelihood (per sequence).

    Works directly on lane-padded log-probs: padded classes carry ~-1e30
    emissions, so they never contribute to the logsumexp recursion.
    """
    B, L, T = logits.shape
    maskf = mask.astype(jnp.float32)

    logits_t = jnp.swapaxes(logits, 0, 1)      # (L, B, T)
    mask_t = jnp.swapaxes(maskf, 0, 1)         # (L, B)

    def fwd_step(alpha, inp):
        emit, m = inp
        scores = alpha[:, :, None] + trans[None, :, :] + emit[:, None, :]
        new_alpha = jax.nn.logsumexp(scores, axis=1)
        alpha = m[:, None] * new_alpha + (1.0 - m[:, None]) * alpha
        return alpha, None

    alpha0 = start[None, :] + logits_t[0]
    alpha, _ = lax.scan(fwd_step, alpha0, (logits_t[1:], mask_t[1:]))
    alpha = alpha + end[None, :]
    log_z = jax.nn.logsumexp(alpha, axis=1)    # (B,)

    batch_idx = jnp.arange(B)
    emit_sc = jnp.take_along_axis(logits, tags[..., None], axis=-1)[..., 0]
    emit_sum = jnp.sum(emit_sc * maskf, axis=1)
    trans_sc = trans[tags[:, :-1], tags[:, 1:]]
    trans_sum = jnp.sum(trans_sc * maskf[:, 1:], axis=1)
    start_sc = start[tags[:, 0]]
    last_idx = jnp.sum(mask, axis=1).astype(jnp.int32) - 1
    end_sc = end[tags[batch_idx, last_idx]]
    gold = emit_sum + trans_sum + start_sc + end_sc
    return log_z - gold


def tener_forward(params, chars, target, d_model, n_head):
    B, L = chars.shape
    hd = d_model // n_head
    half = hd // 2
    assert hd % 2 == 0 and half >= 2, "head_dim must be even and >= 4"
    mask = chars != 0
    mask_f = mask.astype(jnp.float32).reshape(B, 1, L)

    # embedding lookup (gather glue)
    x = jnp.take(params['embed'], chars, axis=0)                 # (B, L, E)
    x = linear(x.reshape(B * L, -1),
               params['in_fc_w'].astype(jnp.bfloat16), params['in_fc_b'])
    x = x.reshape(B, L, d_model)

    # absolute-position sinusoid features; together with the in-kernel
    # rotation they reproduce exactly the relative table R_{j-i} / R_{i-j}
    # of the reference (concat-[sin|cos] layout, same frequencies as the
    # (2L, hd) relative sinusoid table).
    scale = math.log(10000.0) / (half - 1)
    inv = jnp.exp(jnp.arange(half, dtype=jnp.float32) * -scale)   # (half,)
    pos = jnp.arange(L, dtype=jnp.float32)
    ang = pos[:, None] * inv[None, :]                             # (L, half)
    sincos = jnp.concatenate([jnp.sin(ang), jnp.cos(ang)], axis=-1)  # (L, hd)

    for lp in params['layers']:
        # ---- relative multi-head self-attention with fused qv projection ----
        attn = rel_attention(x, lp['qv_w'].astype(jnp.bfloat16), sincos,
                             lp['r_r_bias'], lp['r_w_bias'], mask_f, n_head)
        # ---- fused residual+LN1 + position-wise FFN + residual+LN2 ----
        x = post_attn_ffn(attn.reshape(B * L, d_model),
                          x.reshape(B * L, d_model),
                          lp).reshape(B, L, d_model)

    # fc_dropout is identity at inference
    logits = out_fc_logsoftmax(x.reshape(B * L, d_model),
                               params['out_fc_w'], params['out_fc_b'])
    tpad = logits.shape[-1]
    logits = logits.reshape(B, L, tpad)

    # CRF runs on the lane-padded log-probs (no post-kernel slice); pad the
    # CRF parameters with zeros to match (padded classes never contribute).
    n_tags = params['crf_trans'].shape[0]
    pad = tpad - n_tags
    trans = jnp.pad(params['crf_trans'], ((0, pad), (0, pad)))
    start = jnp.pad(params['crf_start'], (0, pad))
    end = jnp.pad(params['crf_end'], (0, pad))
    # TODO(synk): fastNLP allowed_transitions depends on the tag-vocab encoding
    # scheme (BIO/BMES); here all transitions between real tags are allowed.
    loss = crf_nll(logits, target, mask, trans, start, end)
    return {'loss': loss}


# ------------------------------ parameters ---------------------------------

def init_params(key, vocab, n_tags, embed_size, d_model, n_head,
                ffn_dim, num_layers):
    hd = d_model // n_head
    ks = jax.random.split(key, 6 + num_layers)

    def uinit(k, shape, fan_in):
        lim = 1.0 / math.sqrt(fan_in)
        return jax.random.uniform(k, shape, jnp.float32, -lim, lim)

    params = {
        'embed': jax.random.normal(ks[0], (vocab, embed_size), jnp.float32) * 0.1,
        'in_fc_w': uinit(ks[1], (embed_size, d_model), embed_size),
        'in_fc_b': jnp.zeros((d_model,), jnp.float32),
        'out_fc_w': uinit(ks[2], (d_model, n_tags), d_model),
        'out_fc_b': jnp.zeros((n_tags,), jnp.float32),
        'crf_trans': jax.random.normal(ks[3], (n_tags, n_tags), jnp.float32) * 0.1,
        'crf_start': jax.random.normal(ks[4], (n_tags,), jnp.float32) * 0.1,
        'crf_end': jax.random.normal(ks[5], (n_tags,), jnp.float32) * 0.1,
        'layers': [],
    }
    for li in range(num_layers):
        lk = jax.random.split(ks[6 + li], 5)
        xav = math.sqrt(2.0 / (n_head + hd))
        params['layers'].append({
            'qv_w': uinit(lk[0], (d_model, 2 * d_model), d_model),
            'r_r_bias': jax.random.normal(lk[1], (n_head, hd), jnp.float32) * xav,
            'r_w_bias': jax.random.normal(lk[2], (n_head, hd), jnp.float32) * xav,
            'ln1_g': jnp.ones((d_model,), jnp.float32),
            'ln1_b': jnp.zeros((d_model,), jnp.float32),
            'ln2_g': jnp.ones((d_model,), jnp.float32),
            'ln2_b': jnp.zeros((d_model,), jnp.float32),
            'ffn_w1': uinit(lk[3], (d_model, ffn_dim), d_model),
            'ffn_b1': jnp.zeros((ffn_dim,), jnp.float32),
            'ffn_w2': uinit(lk[4], (ffn_dim, d_model), ffn_dim),
            'ffn_b2': jnp.zeros((d_model,), jnp.float32),
        })
    return params


# ---------------------------------- main ------------------------------------

if __name__ == "__main__":
    key = jax.random.PRNGKey(0)
    B, L = 2, 8
    vocab, n_tags = 50, 9
    embed_size, d_model, n_head, ffn_dim, num_layers = 32, 32, 4, 64, 2

    kc, kt, kp = jax.random.split(key, 3)
    chars = jax.random.randint(kc, (B, L), 1, vocab, dtype=jnp.int32)
    chars = chars.at[1, -2:].set(0)          # padding to exercise the mask
    target = jax.random.randint(kt, (B, L), 0, n_tags, dtype=jnp.int32)

    params = init_params(kp, vocab, n_tags, embed_size, d_model, n_head,
                         ffn_dim, num_layers)

    try:
        out = tener_forward(params, chars, target, d_model, n_head)
    except Exception:
        # Older Pallas/Mosaic versions may reject single-buffered weight
        # blocks (pl.Buffered(1)); retry with default double-buffering.
        _SINGLE_BUFFER_WEIGHTS = False
        out = tener_forward(params, chars, target, d_model, n_head)

    jax.block_until_ready(out['loss'])
    print("KERNEL_OK")
</pallas_src>

<mosaic_0001>
module attributes {stable_mosaic.version = 11 : i64} {
  func.func @_linear_kernel(%arg0: i32, %arg1: memref<16x32xf32, #tpu.memory_space<vmem>>, %arg2: memref<32x32xbf16, #tpu.memory_space<vmem>>, %arg3: memref<1x32xf32, #tpu.memory_space<vmem>>, %arg4: memref<16x32xf32, #tpu.memory_space<vmem>>) attributes {dimension_semantics = [#tpu.dimension_semantics<parallel>], iteration_bounds = array<i64: 1>, scalar_prefetch = 0 : i64, scratch_operands = 0 : i64, tpu.core_type = #tpu.core_type<tc>, window_params = [{transform_indices = @transform_0, window_bounds = array<i64: 16, 32>}, {pipeline_mode = #tpu.pipeline_mode<synchronous>, transform_indices = @transform_1, window_bounds = array<i64: 32, 32>}, {pipeline_mode = #tpu.pipeline_mode<synchronous>, transform_indices = @transform_2, window_bounds = array<i64: 1, 32>}, {transform_indices = @transform_3, window_bounds = array<i64: 16, 32>}]} {
    %c0 = arith.constant 0 : index
    %c0_0 = arith.constant 0 : index
    %0 = vector.load %arg1[%c0, %c0_0] : memref<16x32xf32, #tpu.memory_space<vmem>>, vector<16x32xf32>
    %1 = arith.truncf %0 : vector<16x32xf32> to vector<16x32xbf16>
    %c0_1 = arith.constant 0 : index
    %c0_2 = arith.constant 0 : index
    %2 = vector.load %arg2[%c0_1, %c0_2] : memref<32x32xbf16, #tpu.memory_space<vmem>>, vector<32x32xbf16>
    %cst = arith.constant dense<0.000000e+00> : vector<16x32xf32>
    %3 = tpu.matmul %1, %2, %cst {dimension_numbers = #tpu.dot_dimension_numbers<[1], [0], [0], [1], [0, 0, 1, 1], [], []>} : vector<16x32xbf16>, vector<32x32xbf16>, vector<16x32xf32> -> vector<16x32xf32>
    %c0_3 = arith.constant 0 : index
    %c0_4 = arith.constant 0 : index
    %4 = vector.load %arg3[%c0_3, %c0_4] : memref<1x32xf32, #tpu.memory_space<vmem>>, vector<1x32xf32>
    %5 = vector.broadcast %4 : vector<1x32xf32> to vector<16x32xf32>
    %6 = arith.addf %3, %5 : vector<16x32xf32>
    %c0_5 = arith.constant 0 : index
    %c0_6 = arith.constant 0 : index
    %7 = vector.load %arg4[%c0_5, %c0_6] : memref<16x32xf32, #tpu.memory_space<vmem>>, vector<16x32xf32>
    tpu.vector_store %arg4[%c0_5, %c0_6], %6 {strides = array<i32>} : memref<16x32xf32, #tpu.memory_space<vmem>>, vector<16x32xf32>,
    return
  }
  func.func @transform_0(%arg0: i32) -> (i32, i32) {
    %c0_i32 = arith.constant 0 : i32
    %c0_i32_0 = arith.constant 0 : i32
    return %arg0, %c0_i32 : i32, i32
  }
  func.func @transform_1(%arg0: i32) -> (i32, i32) {
    %c0_i32 = arith.constant 0 : i32
    %c0_i32_0 = arith.constant 0 : i32
    %c0_i32_1 = arith.constant 0 : i32
    return %c0_i32, %c0_i32_0 : i32, i32
  }
  func.func @transform_2(%arg0: i32) -> (i32, i32) {
    %c0_i32 = arith.constant 0 : i32
    %c0_i32_0 = arith.constant 0 : i32
    %c0_i32_1 = arith.constant 0 : i32
    return %c0_i32, %c0_i32_0 : i32, i32
  }
  func.func @transform_3(%arg0: i32) -> (i32, i32) {
    %c0_i32 = arith.constant 0 : i32
    %c0_i32_0 = arith.constant 0 : i32
    return %arg0, %c0_i32 : i32, i32
  }
}

module attributes {stable_mosaic.version = 11 : i64} {
  func.func @_linear_kernel(%arg0: i32, %arg1: memref<16x32xf32, #tpu.memory_space<vmem>>, %arg2: memref<32x32xbf16, #tpu.memory_space<vmem>>, %arg3: memref<1x32xf32, #tpu.memory_space<vmem>>, %arg4: memref<16x32xf32, #tpu.memory_space<vmem>>) attributes {dimension_semantics = [#tpu.dimension_semantics<parallel>], iteration_bounds = array<i64: 1>, scalar_prefetch = 0 : i64, scratch_operands = 0 : i64, tpu.core_type = #tpu.core_type<tc>, window_params = [{transform_indices = @transform_0, window_bounds = array<i64: 16, 32>}, {pipeline_mode = #tpu.pipeline_mode<synchronous>, transform_indices = @transform_1, window_bounds = array<i64: 32, 32>}, {pipeline_mode = #tpu.pipeline_mode<synchronous>, transform_indices = @transform_2, window_bounds = array<i64: 1, 32>}, {transform_indices = @transform_3, window_bounds = array<i64: 16, 32>}]} {
    %c0 = arith.constant 0 : index
    %c0_0 = arith.constant 0 : index
    %0 = vector.load %arg1[%c0, %c0_0] : memref<16x32xf32, #tpu.memory_space<vmem>>, vector<16x32xf32>
    %1 = arith.truncf %0 : vector<16x32xf32> to vector<16x32xbf16>
    %c0_1 = arith.constant 0 : index
    %c0_2 = arith.constant 0 : index
    %2 = vector.load %arg2[%c0_1, %c0_2] : memref<32x32xbf16, #tpu.memory_space<vmem>>, vector<32x32xbf16>
    %cst = arith.constant dense<0.000000e+00> : vector<16x32xf32>
    %3 = tpu.matmul %1, %2, %cst {dimension_numbers = #tpu.dot_dimension_numbers<[1], [0], [0], [1], [0, 0, 1, 1], [], []>} : vector<16x32xbf16>, vector<32x32xbf16>, vector<16x32xf32> -> vector<16x32xf32>
    %c0_3 = arith.constant 0 : index
    %c0_4 = arith.constant 0 : index
    %4 = vector.load %arg3[%c0_3, %c0_4] : memref<1x32xf32, #tpu.memory_space<vmem>>, vector<1x32xf32>
    %5 = vector.broadcast %4 : vector<1x32xf32> to vector<16x32xf32>
    %6 = arith.addf %3, %5 : vector<16x32xf32>
    %c0_5 = arith.constant 0 : index
    %c0_6 = arith.constant 0 : index
    %7 = vector.load %arg4[%c0_5, %c0_6] : memref<16x32xf32, #tpu.memory_space<vmem>>, vector<16x32xf32>
    tpu.vector_store %arg4[%c0_5, %c0_6], %6 {strides = array<i32>} : memref<16x32xf32, #tpu.memory_space<vmem>>, vector<16x32xf32>,
    return
  }
  func.func @transform_0(%arg0: i32) -> (i32, i32) {
    %c0_i32 = arith.constant 0 : i32
    %c0_i32_0 = arith.constant 0 : i32
    return %arg0, %c0_i32 : i32, i32
  }
  func.func @transform_1(%arg0: i32) -> (i32, i32) {
    %c0_i32 = arith.constant 0 : i32
    %c0_i32_0 = arith.constant 0 : i32
    %c0_i32_1 = arith.constant 0 : i32
    return %c0_i32, %c0_i32_0 : i32, i32
  }
  func.func @transform_2(%arg0: i32) -> (i32, i32) {
    %c0_i32 = arith.constant 0 : i32
    %c0_i32_0 = arith.constant 0 : i32
    %c0_i32_1 = arith.constant 0 : i32
    return %c0_i32, %c0_i32_0 : i32, i32
  }
  func.func @transform_3(%arg0: i32) -> (i32, i32) {
    %c0_i32 = arith.constant 0 : i32
    %c0_i32_0 = arith.constant 0 : i32
    return %arg0, %c0_i32 : i32, i32
  }
}

</mosaic_0001>

<bundles_post_ra>
// kernel: tpu_custom_call.1
= control target key start
LH: loop header
LB: loop body
LE: loop exit
PB: predicated region body
PF: predicated region fallthrough
CT: control target
= control target key end

     0   :  { %8 = vsyncpa [#allocation3], 0  ;;  %s253_s0 = inlined_call_operand.hbm [shape: f32[16,32], index: 0, kind: input, shape index: {}]   ;;  %s254_s1 = inlined_call_operand.hbm [shape: bf16[32,32], index: 1, kind: input, shape index: {}]   ;;  %s255_s2 = inlined_call_operand.vmem [shape: f32[1,32], index: 2, kind: input, shape index: {}]   ;;  %s256_s3 = inlined_call_operand.hbm [shape: f32[16,32], index: 3, kind: output, shape index: {}]  }
   0x1   :  { %9 = vsyncpa [#allocation6], 0 }
   0x2   :  { %10 = vsyncpa [#allocation4], 0  ;;  %s15_s14 = sshll.u32 %s253_s0, 4  ;;  %s208_s15 = smov [#allocation2]   ;;  %s16_s14 = int_to_ptr.hbm [resolvable:$true] %s15_s14 }
   0x3   :  { %s17_s16 = sshll.u32 %s208_s15, 4  ;;  %s28_s19 = sshll.u32 %s254_s1, 4  ;;  %s18_s16 = int_to_ptr.vmem [resolvable:$true] %s17_s16  ;;  %s29_s19 = int_to_ptr.hbm [resolvable:$true] %s28_s19 }
   0x4   :  { %s209_s20 = smov 128   ;;  %s210_s21 = smov 8  }
   0x5   :  { %23 = dma.hbm_to_vmem [thread:$0]  %s16_s14, 256, %s18_s16, [#allocation3], %s209_s20, %s209_s20, %s210_s21  }
   0x6   :  { %s211_s22 = smov [#allocation5]   ;;  %s212_s24 = smov 64  }
   0x7   :  { %s30_s23 = sshll.u32 %s211_s22, 4  ;;  %s213_s0 = smov 4   ;;  %s31_s23 = int_to_ptr.vmem [resolvable:$true] %s30_s23 }
   0x8   :  { %36 = dma.hbm_to_vmem [thread:$0]  %s29_s19, 256, %s31_s23, [#allocation6], %s212_s24, %s212_s24, %s213_s0  }
   0x9   :  { %202 = dma.done.wait [#allocation3], 256  }
   0xa   :  { %203 = vsyncadd [#allocation3], 4294967040 }
   0xb   :  { %204 = dma.done.wait [#allocation6], 256  }
   0xc   :  { %205 = vsyncadd [#allocation6], 4294967040  ;;  %v121_v0 = vld [vmem:[#allocation5 + $0x8] sm:$0xff]  ;;  %v120_v1 = vld [vmem:[#allocation5] sm:$0xff]  ;;  %vm71_vm0 = vcmask 261120   ;;  %s214_s26 = smov [#allocation7]  }
   0xd   :  { %81 = vmatpush.bf16.msra.mxu0 %v121_v0  ;;  %v48_v2 = vld [vmem:[#allocation2] sm:$0xff]  ;;  %v49_v3 = vld [vmem:[#allocation2 + $0x8] sm:$0xff]  ;;  %s95_s27 = sshll.u32 %s214_s26, 4  ;;  %s97_s30 = sshll.u32 %s256_s3, 4  ;;  %s96_s27 = int_to_ptr.vmem [resolvable:$true] %s95_s27  ;;  %s98_s30 = int_to_ptr.hbm [resolvable:$true] %s97_s30 }
   0xe   :  { %v50_v4 = vpack.c.bf16 %v49_v3, %v48_v2  ;;  %v129_v5 = vld [vmem:[%s255_s2] ss:$0 sm:$0xff] }
  0x11   :  { %82 = vmatpush.bf16.msra.mxu0 %v120_v1 }
  0x14   :  { %119 = vmatmul.msk.bf16.vlgmr.msra.gmra.mxu0 %vm71_vm0, %v50_v4 }
  0x91   :  { %v84_v6 = vpop.f32.mrf.mxu0 }
  0x92   :  { %v85_v7 = vadd.f32 %v129_v5, %v84_v6 }
  0x94   :  { %89 = vst.msk [vmem:[#allocation7] sm:$0xff] %vm71_vm0, %v85_v7 }
  0x99   :  { %v86_v8 = vpop.f32.mrf.mxu0 }
  0x9a   :  { %v87_v9 = vadd.f32 %v129_v5, %v86_v8 }
  0x9c   :  { %90 = vst.msk [vmem:[#allocation7 + $0x8] sm:$0xff] %vm71_vm0, %v87_v9 }
  0x9d   :  { %103 = dma.vmem_to_hbm [thread:$0]  %s96_s27, 256, %s98_s30, [#allocation4], %s209_s20, %s209_s20, %s210_s21  }
  0x9e   :  { %206 = dma.done.wait [#allocation4], 256  }
  0x9f   :  { %207 = vsyncadd [#allocation4], 4294967040 }
  0xa0   :  { %108 = vsyncpa [#allocation3], 1 }
  0xa1   :  { %109 = vsyncpa [#allocation6], 1 }
  0xa2   :  { %110 = vsyncpa [#allocation4], 1 }

// kernel: tpu_custom_call.1
= control target key start
LH: loop header
LB: loop body
LE: loop exit
PB: predicated region body
PF: predicated region fallthrough
CT: control target
= control target key end

     0   :  { %8 = vsyncpa [#allocation3], 0  ;;  %s253_s0 = inlined_call_operand.hbm [shape: f32[16,32], index: 0, kind: input, shape index: {}]   ;;  %s254_s1 = inlined_call_operand.hbm [shape: bf16[32,32], index: 1, kind: input, shape index: {}]   ;;  %s255_s2 = inlined_call_operand.vmem [shape: f32[1,32], index: 2, kind: input, shape index: {}]   ;;  %s256_s3 = inlined_call_operand.hbm [shape: f32[16,32], index: 3, kind: output, shape index: {}]  }
   0x1   :  { %9 = vsyncpa [#allocation6], 0 }
   0x2   :  { %10 = vsyncpa [#allocation4], 0  ;;  %s15_s14 = sshll.u32 %s253_s0, 4  ;;  %s208_s15 = smov [#allocation2]   ;;  %s16_s14 = int_to_ptr.hbm [resolvable:$true] %s15_s14 }
   0x3   :  { %s17_s16 = sshll.u32 %s208_s15, 4  ;;  %s28_s19 = sshll.u32 %s254_s1, 4  ;;  %s18_s16 = int_to_ptr.vmem [resolvable:$true] %s17_s16  ;;  %s29_s19 = int_to_ptr.hbm [resolvable:$true] %s28_s19 }
   0x4   :  { %s209_s20 = smov 128   ;;  %s210_s21 = smov 8  }
   0x5   :  { %23 = dma.hbm_to_vmem [thread:$0]  %s16_s14, 256, %s18_s16, [#allocation3], %s209_s20, %s209_s20, %s210_s21  }
   0x6   :  { %s211_s22 = smov [#allocation5]   ;;  %s212_s24 = smov 64  }
   0x7   :  { %s30_s23 = sshll.u32 %s211_s22, 4  ;;  %s213_s0 = smov 4   ;;  %s31_s23 = int_to_ptr.vmem [resolvable:$true] %s30_s23 }
   0x8   :  { %36 = dma.hbm_to_vmem [thread:$0]  %s29_s19, 256, %s31_s23, [#allocation6], %s212_s24, %s212_s24, %s213_s0  }
   0x9   :  { %202 = dma.done.wait [#allocation3], 256  }
   0xa   :  { %203 = vsyncadd [#allocation3], 4294967040 }
   0xb   :  { %204 = dma.done.wait [#allocation6], 256  }
   0xc   :  { %205 = vsyncadd [#allocation6], 4294967040  ;;  %v121_v0 = vld [vmem:[#allocation5 + $0x8] sm:$0xff]  ;;  %v120_v1 = vld [vmem:[#allocation5] sm:$0xff]  ;;  %vm71_vm0 = vcmask 261120   ;;  %s214_s26 = smov [#allocation7]  }
   0xd   :  { %81 = vmatpush.bf16.msra.mxu0 %v121_v0  ;;  %v48_v2 = vld [vmem:[#allocation2] sm:$0xff]  ;;  %v49_v3 = vld [vmem:[#allocation2 + $0x8] sm:$0xff]  ;;  %s95_s27 = sshll.u32 %s214_s26, 4  ;;  %s97_s30 = sshll.u32 %s256_s3, 4  ;;  %s96_s27 = int_to_ptr.vmem [resolvable:$true] %s95_s27  ;;  %s98_s30 = int_to_ptr.hbm [resolvable:$true] %s97_s30 }
   0xe   :  { %v50_v4 = vpack.c.bf16 %v49_v3, %v48_v2  ;;  %v129_v5 = vld [vmem:[%s255_s2] ss:$0 sm:$0xff] }
  0x11   :  { %82 = vmatpush.bf16.msra.mxu0 %v120_v1 }
  0x14   :  { %119 = vmatmul.msk.bf16.vlgmr.msra.gmra.mxu0 %vm71_vm0, %v50_v4 }
  0x91   :  { %v84_v6 = vpop.f32.mrf.mxu0 }
  0x92   :  { %v85_v7 = vadd.f32 %v129_v5, %v84_v6 }
  0x94   :  { %89 = vst.msk [vmem:[#allocation7] sm:$0xff] %vm71_vm0, %v85_v7 }
  0x99   :  { %v86_v8 = vpop.f32.mrf.mxu0 }
  0x9a   :  { %v87_v9 = vadd.f32 %v129_v5, %v86_v8 }
  0x9c   :  { %90 = vst.msk [vmem:[#allocation7 + $0x8] sm:$0xff] %vm71_vm0, %v87_v9 }
  0x9d   :  { %103 = dma.vmem_to_hbm [thread:$0]  %s96_s27, 256, %s98_s30, [#allocation4], %s209_s20, %s209_s20, %s210_s21  }
  0x9e   :  { %206 = dma.done.wait [#allocation4], 256  }
  0x9f   :  { %207 = vsyncadd [#allocation4], 4294967040 }
  0xa0   :  { %108 = vsyncpa [#allocation3], 1 }
  0xa1   :  { %109 = vsyncpa [#allocation6], 1 }
  0xa2   :  { %110 = vsyncpa [#allocation4], 1 }

</bundles_post_ra>
